<compile_context>
chip_gen: v7x
topology: tpu7x:2x2x1
jax: 0.10.0
libtpu: 0.0.40
codegen_flags: <defaults>
</compile_context>

<pallas_src>
import functools

import jax
import jax.numpy as jnp
from jax.experimental import pallas as pl
from jax.experimental.pallas import tpu as pltpu


def _round_up(n, m):
    return ((n + m - 1) // m) * m


def dynamic_mlp_kernel(x_ref, w1_ref, b1_ref, w2_ref, b2_ref, out_ref, *,
                       tm, m_total):
    # x_ref:  (TM, D)       VMEM (streamed tile of x)
    # w1_ref: (D, H)        VMEM, resident (constant index map)
    # b1_ref: (1, H)        VMEM, resident
    # w2_ref: (1, H)        VMEM, resident (fc2 weight as a row)
    # b2_ref: (1,)          SMEM scalar
    # out_ref:(1, 8, 128)   VMEM lane-dense per-block partial-sum tile
    i = pl.program_id(0)

    x = x_ref[...]
    # fc1 on the MXU with fp32 accumulation, ReLU on the VPU.
    h = jnp.dot(x, w1_ref[...], preferred_element_type=jnp.float32)
    h = jnp.maximum(h + b1_ref[...], 0.0)

    # fc2 (out_features == 1): VPU multiply + lane reduce instead of an MXU
    # pass at <0.1% utilization.
    y = jnp.sum(h * w2_ref[...], axis=-1, keepdims=True) + b2_ref[0]   # (TM, 1)
    ratio = 0.5 + 0.5 * jax.nn.sigmoid(y)                              # (TM, 1)

    # Mask rows that are padding (M rounded up to a multiple of TM);
    # sigmoid of a padded row would otherwise bias the mean.
    row = i * tm + jax.lax.broadcasted_iota(jnp.int32, ratio.shape, 0)
    ratio = jnp.where(row < m_total, ratio, 0.0)

    partial = jnp.sum(ratio)  # scalar partial sum for this tile
    # Broadcast into a full lane-dense tile -> unmasked vector store.
    out_ref[...] = jnp.full(out_ref.shape, partial, dtype=out_ref.dtype)


def dynamic_mlp(x, w1, b1, w2, b2, *, tm=None):
    """x: (..., input_dim); weights in PyTorch layout (out, in). Returns scalar."""
    input_dim = x.shape[-1]
    x2d = x.reshape(-1, input_dim).astype(jnp.float32)
    M, D = x2d.shape
    H = w1.shape[0]

    # Tile size over rows: large enough to amortize the ~0.35 us/step overhead,
    # small enough that 2 x (TM*D*4) buffers + fp32 temporaries fit VMEM on all
    # generations (incl. v7x 64 MiB): target ~2 MiB per x tile.
    if tm is None:
        tm = (2 * 1024 * 1024) // (D * 4)
    tm = max(8, min(4096, (tm // 8) * 8))
    tm = min(tm, _round_up(M, 8))

    m_pad = _round_up(M, tm)
    if m_pad != M:
        x2d = jnp.pad(x2d, ((0, m_pad - M), (0, 0)))
    num_blocks = m_pad // tm

    w1_t = jnp.asarray(w1, jnp.float32).T               # (D, H)
    b1_r = jnp.asarray(b1, jnp.float32).reshape(1, H)   # (1, H)
    w2_r = jnp.asarray(w2, jnp.float32).reshape(1, H)   # (1, H)
    b2_s = jnp.asarray(b2, jnp.float32).reshape(1)      # (1,) scalar via SMEM

    kernel = functools.partial(dynamic_mlp_kernel, tm=tm, m_total=M)

    partials = pl.pallas_call(
        kernel,
        out_shape=jax.ShapeDtypeStruct((num_blocks, 8, 128), jnp.float32),
        grid=(num_blocks,),
        in_specs=[
            pl.BlockSpec((tm, D), lambda i: (i, 0)),      # x: streamed over M
            pl.BlockSpec((D, H), lambda i: (0, 0)),       # w1: resident
            pl.BlockSpec((1, H), lambda i: (0, 0)),       # b1: resident
            pl.BlockSpec((1, H), lambda i: (0, 0)),       # w2 row: resident
            pl.BlockSpec(memory_space=pltpu.MemorySpace.SMEM),  # b2 scalar
        ],
        out_specs=pl.BlockSpec((1, 8, 128), lambda i: (i, 0, 0)),
        compiler_params=pltpu.CompilerParams(
            dimension_semantics=("parallel",),
        ),
    )(x2d, w1_t, b1_r, w2_r, b2_s)

    # Every element of a block's (8,128) tile holds that block's partial sum;
    # finish the mean here (divide by the GLOBAL row count M).
    return jnp.sum(partials[:, 0, 0]) / M


def _ref_forward(x, w1, b1, w2, b2):
    """Pure-JAX reference matching the PyTorch module."""
    x2d = x.reshape(-1, x.shape[-1]).astype(jnp.float32)
    h = jnp.maximum(x2d @ w1.T + b1, 0.0)
    y = h @ w2.T + b2
    return jnp.mean(0.5 + 0.5 * jax.nn.sigmoid(y))


if __name__ == "__main__":
    # Small shapes consistent with the module (input_dim, hidden_dim, out=1).
    input_dim, hidden_dim, output_dim = 128, 64, 1
    batch, seq = 2, 9   # M = 18: not a multiple of 8 -> exercises row masking

    key = jax.random.PRNGKey(0)
    kx, kw1, kb1, kw2, kb2 = jax.random.split(key, 5)

    x = jax.random.normal(kx, (batch, seq, input_dim), dtype=jnp.float32)

    # PyTorch-style uniform init: U(-1/sqrt(fan_in), 1/sqrt(fan_in)).
    lim1 = 1.0 / jnp.sqrt(input_dim)
    w1 = jax.random.uniform(kw1, (hidden_dim, input_dim), minval=-lim1, maxval=lim1)
    b1 = jax.random.uniform(kb1, (hidden_dim,), minval=-lim1, maxval=lim1)
    lim2 = 1.0 / jnp.sqrt(hidden_dim)
    w2 = jax.random.uniform(kw2, (output_dim, hidden_dim), minval=-lim2, maxval=lim2)
    b2 = jax.random.uniform(kb2, (output_dim,), minval=-lim2, maxval=lim2)

    ref = _ref_forward(x, w1, b1, w2, b2)

    # Default tile size (single block for this tiny M).
    out = dynamic_mlp(x, w1, b1, w2, b2)
    jax.block_until_ready(out)
    assert jnp.allclose(out, ref, rtol=1e-5, atol=1e-5), (out, ref)

    # Forced small tile -> multi-block grid + padded-row masking path.
    out_tiled = dynamic_mlp(x, w1, b1, w2, b2, tm=8)
    jax.block_until_ready(out_tiled)
    assert jnp.allclose(out_tiled, ref, rtol=1e-5, atol=1e-5), (out_tiled, ref)

    print("KERNEL_OK")
</pallas_src>

<mosaic_0001>
module attributes {stable_mosaic.version = 11 : i64} {
  func.func @dynamic_mlp_kernel(%arg0: i32, %arg1: memref<24x128xf32, #tpu.memory_space<vmem>>, %arg2: memref<128x64xf32, #tpu.memory_space<vmem>>, %arg3: memref<1x64xf32, #tpu.memory_space<vmem>>, %arg4: memref<1x64xf32, #tpu.memory_space<vmem>>, %arg5: memref<1xf32, #tpu.memory_space<smem>>, %arg6: memref<1x8x128xf32, #tpu.memory_space<vmem>>) attributes {dimension_semantics = [#tpu.dimension_semantics<parallel>], iteration_bounds = array<i64: 1>, scalar_prefetch = 0 : i64, scratch_operands = 0 : i64, tpu.core_type = #tpu.core_type<tc>, window_params = [{transform_indices = @transform_0, window_bounds = array<i64: 24, 128>}, {pipeline_mode = #tpu.pipeline_mode<synchronous>, transform_indices = @transform_1, window_bounds = array<i64: 128, 64>}, {pipeline_mode = #tpu.pipeline_mode<synchronous>, transform_indices = @transform_2, window_bounds = array<i64: 1, 64>}, {pipeline_mode = #tpu.pipeline_mode<synchronous>, transform_indices = @transform_3, window_bounds = array<i64: 1, 64>}, {transform_indices = @transform_4, window_bounds = array<i64: 1>}, {transform_indices = @transform_5, window_bounds = array<i64: 1, 8, 128>}]} {
    %c0 = arith.constant 0 : index
    %c0_0 = arith.constant 0 : index
    %0 = vector.load %arg1[%c0, %c0_0] : memref<24x128xf32, #tpu.memory_space<vmem>>, vector<24x128xf32>
    %c0_1 = arith.constant 0 : index
    %c0_2 = arith.constant 0 : index
    %1 = vector.load %arg2[%c0_1, %c0_2] : memref<128x64xf32, #tpu.memory_space<vmem>>, vector<128x64xf32>
    %cst = arith.constant dense<0.000000e+00> : vector<24x64xf32>
    %2 = tpu.matmul %0, %1, %cst {dimension_numbers = #tpu.dot_dimension_numbers<[1], [0], [0], [1], [0, 0, 1, 1], [], []>} : vector<24x128xf32>, vector<128x64xf32>, vector<24x64xf32> -> vector<24x64xf32>
    %c0_3 = arith.constant 0 : index
    %c0_4 = arith.constant 0 : index
    %3 = vector.load %arg3[%c0_3, %c0_4] : memref<1x64xf32, #tpu.memory_space<vmem>>, vector<1x64xf32>
    %4 = vector.broadcast %3 : vector<1x64xf32> to vector<24x64xf32>
    %5 = arith.addf %2, %4 : vector<24x64xf32>
    %cst_5 = arith.constant 0.000000e+00 : f32
    %6 = vector.broadcast %cst_5 : f32 to vector<24x64xf32>
    %7 = arith.maximumf %5, %6 : vector<24x64xf32>
    %c0_6 = arith.constant 0 : index
    %c0_7 = arith.constant 0 : index
    %8 = vector.load %arg4[%c0_6, %c0_7] : memref<1x64xf32, #tpu.memory_space<vmem>>, vector<1x64xf32>
    %9 = vector.broadcast %8 : vector<1x64xf32> to vector<24x64xf32>
    %10 = arith.mulf %7, %9 : vector<24x64xf32>
    %cst_8 = arith.constant dense<0.000000e+00> : vector<24xf32>
    %11 = vector.multi_reduction <add>, %10, %cst_8 [1] : vector<24x64xf32> to vector<24xf32>
    %12 = vector.shape_cast %11 : vector<24xf32> to vector<24x1xf32>
    %c0_9 = arith.constant 0 : index
    %13 = memref.load %arg5[%c0_9] : memref<1xf32, #tpu.memory_space<smem>>
    %14 = vector.broadcast %13 : f32 to vector<24x1xf32>
    %15 = arith.addf %12, %14 : vector<24x1xf32>
    %16 = arith.negf %15 : vector<24x1xf32>
    %17 = math.exp %16 : vector<24x1xf32>
    %cst_10 = arith.constant 1.000000e+00 : f32
    %18 = vector.broadcast %cst_10 : f32 to vector<24x1xf32>
    %19 = arith.addf %18, %17 : vector<24x1xf32>
    %20 = arith.divf %18, %19 : vector<24x1xf32>
    %cst_11 = arith.constant 5.000000e-01 : f32
    %21 = vector.broadcast %cst_11 : f32 to vector<24x1xf32>
    %22 = arith.mulf %21, %20 : vector<24x1xf32>
    %cst_12 = arith.constant 5.000000e-01 : f32
    %23 = vector.broadcast %cst_12 : f32 to vector<24x1xf32>
    %24 = arith.addf %23, %22 : vector<24x1xf32>
    %c24_i32 = arith.constant 24 : i32
    %25 = arith.muli %arg0, %c24_i32 : i32
    %26 = tpu.iota {dimensions = array<i32: 0>} : vector<24x1xi32>
    %27 = vector.broadcast %25 : i32 to vector<24x1xi32>
    %28 = arith.addi %27, %26 : vector<24x1xi32>
    %c18_i32 = arith.constant 18 : i32
    %29 = vector.broadcast %c18_i32 : i32 to vector<24x1xi32>
    %30 = arith.cmpi slt, %28, %29 : vector<24x1xi32>
    %cst_13 = arith.constant 0.000000e+00 : f32
    %31 = vector.broadcast %cst_13 : f32 to vector<24x1xf32>
    %32 = arith.select %30, %24, %31 : vector<24x1xi1>, vector<24x1xf32>
    %33 = vector.shape_cast %32 : vector<24x1xf32> to vector<1x24x1xf32>
    %cst_14 = arith.constant dense<0.000000e+00> : vector<1xf32>
    %34 = vector.multi_reduction <add>, %33, %cst_14 [1, 2] : vector<1x24x1xf32> to vector<1xf32>
    %35 = vector.shape_cast %34 : vector<1xf32> to vector<1x1x1xf32>
    %36 = vector.extract %35[0, 0, 0] : f32 from vector<1x1x1xf32>
    %37 = vector.broadcast %36 : f32 to vector<1x8x128xf32>
    %c0_15 = arith.constant 0 : index
    %c0_16 = arith.constant 0 : index
    %c0_17 = arith.constant 0 : index
    %38 = vector.load %arg6[%c0_15, %c0_16, %c0_17] : memref<1x8x128xf32, #tpu.memory_space<vmem>>, vector<1x8x128xf32>
    tpu.vector_store %arg6[%c0_15, %c0_16, %c0_17], %37 {strides = array<i32>} : memref<1x8x128xf32, #tpu.memory_space<vmem>>, vector<1x8x128xf32>,
    return
  }
  func.func @transform_0(%arg0: i32) -> (i32, i32) {
    %c0_i32 = arith.constant 0 : i32
    %c0_i32_0 = arith.constant 0 : i32
    return %arg0, %c0_i32 : i32, i32
  }
  func.func @transform_1(%arg0: i32) -> (i32, i32) {
    %c0_i32 = arith.constant 0 : i32
    %c0_i32_0 = arith.constant 0 : i32
    %c0_i32_1 = arith.constant 0 : i32
    return %c0_i32, %c0_i32_0 : i32, i32
  }
  func.func @transform_2(%arg0: i32) -> (i32, i32) {
    %c0_i32 = arith.constant 0 : i32
    %c0_i32_0 = arith.constant 0 : i32
    %c0_i32_1 = arith.constant 0 : i32
    return %c0_i32, %c0_i32_0 : i32, i32
  }
  func.func @transform_3(%arg0: i32) -> (i32, i32) {
    %c0_i32 = arith.constant 0 : i32
    %c0_i32_0 = arith.constant 0 : i32
    %c0_i32_1 = arith.constant 0 : i32
    return %c0_i32, %c0_i32_0 : i32, i32
  }
  func.func @transform_4(%arg0: i32) -> i32 {
    %c0_i32 = arith.constant 0 : i32
    %c0_i32_0 = arith.constant 0 : i32
    return %c0_i32 : i32
  }
  func.func @transform_5(%arg0: i32) -> (i32, i32, i32) {
    %c0_i32 = arith.constant 0 : i32
    %c0_i32_0 = arith.constant 0 : i32
    %c0_i32_1 = arith.constant 0 : i32
    return %arg0, %c0_i32, %c0_i32_0 : i32, i32, i32
  }
}

</mosaic_0001>

<bundles_post_ra>
// kernel: tpu_custom_call.1
= control target key start
LH: loop header
LB: loop body
LE: loop exit
PB: predicated region body
PF: predicated region fallthrough
CT: control target
= control target key end

     0   :  { %v373_v3 = vmov 0.0|0.0   ;;  %vm374_vm0 = vmmov 0   ;;  %v375_v6 = vmov 0.0   ;;  %s488_s0 = inlined_call_operand.vmem [shape: f32[24,128], index: 0, kind: input, shape index: {}]   ;;  %s489_s1 = inlined_call_operand.vmem [shape: f32[128,64], index: 1, kind: input, shape index: {}]   ;;  %s490_s2 = inlined_call_operand.vmem [shape: f32[1,64], index: 2, kind: input, shape index: {}]   ;;  %s491_s3 = inlined_call_operand.vmem [shape: f32[1,64], index: 3, kind: input, shape index: {}]   ;;  %s492_s4 = inlined_call_operand.<no memory space> [shape: f32[1], index: 4, kind: input, shape index: {}]   ;;  %s493_s5 = inlined_call_operand.hbm [shape: f32[1,8,128], index: 5, kind: output, shape index: {}]  }
   0x1   :  { %v25_v0 = vld [vmem:[%s489_s1] sm:$0xff]  ;;  %v26_v1 = vld [vmem:[%s489_s1 + $0x8] sm:$0xff]  ;;  %v27_v2 = vld [vmem:[%s489_s1 + $0x10] sm:$0xff]  ;;  %291 = vmatprep.subr.bf16.mxu0 %v373_v3  ;;  %315 = vmatprep.subr.bf16.mxu1 %v373_v3 }
   0x2   :  { %v292_v4 = vpack.c.bf16 %v26_v1, %v25_v0  ;;  %v28_v5 = vld [vmem:[%s489_s1 + $0x18] sm:$0xff]  ;;  %282 = vmatprep.mubr.msk.f32.mxu0 %vm374_vm0, %v375_v6  ;;  %285 = vmatprep.mubr.msk.f32.mxu1 %vm374_vm0, %v375_v6  ;;  %v29_v8 = vld [vmem:[%s489_s1 + $0x20] sm:$0xff]  ;;  %v30_v9 = vld [vmem:[%s489_s1 + $0x28] sm:$0xff] }
   0x3   :  { %v295_v7 = vpack.c.bf16 %v28_v5, %v27_v2 }
   0x4   :  { %293 = vmatpush3.bf16.msra.mxu0 %v292_v4  ;;  %323 = vmatpush3.bf16.msra.mxu1 %v292_v4 }
   0x5   :  { %294 = vmatprep.subr.bf16.mxu0 %v373_v3  ;;  %316 = vmatprep.subr.bf16.mxu1 %v373_v3 }
   0x6   :  { %11 = vsyncpa [#allocation4], 0  ;;  %v298_v10 = vpack.c.bf16 %v30_v9, %v29_v8  ;;  %v31_v11 = vld [vmem:[%s489_s1 + $0x30] sm:$0xff]  ;;  %v32_v12 = vld [vmem:[%s489_s1 + $0x38] sm:$0xff]  ;;  %vm141_vm1 = vcmask 523264   ;;  %v152_v49 = vstv %s492_s4  ;;  %v181_v1 = vlaneseq }
   0x7   :  { %v301_v13 = vpack.c.bf16 %v32_v12, %v31_v11  ;;  %v33_v14 = vld [vmem:[%s489_s1 + $0x40] sm:$0xff]  ;;  %v34_v15 = vld [vmem:[%s489_s1 + $0x48] sm:$0xff]  ;;  %v35_v17 = vld [vmem:[%s489_s1 + $0x50] sm:$0xff]  ;;  %vm195_vm2 = vcmask 7168  }
   0x8   :  { %296 = vmatpush3.bf16.msra.mxu0 %v295_v7  ;;  %324 = vmatpush3.bf16.msra.mxu1 %v295_v7  ;;  %v304_v16 = vpack.c.bf16 %v34_v15, %v33_v14  ;;  %v36_v18 = vld [vmem:[%s489_s1 + $0x58] sm:$0xff]  ;;  %v37_v20 = vld [vmem:[%s489_s1 + $0x60] sm:$0xff]  ;;  %v38_v21 = vld [vmem:[%s489_s1 + $0x68] sm:$0xff]  ;;  %v182_v2 = vshrl.u32 %v181_v1, 7 }
   0x9   :  { %297 = vmatprep.subr.bf16.mxu0 %v373_v3  ;;  %317 = vmatprep.subr.bf16.mxu1 %v373_v3  ;;  %v307_v19 = vpack.c.bf16 %v36_v18, %v35_v17  ;;  %v310_v22 = vpack.c.bf16 %v38_v21, %v37_v20  ;;  %v39_v23 = vld [vmem:[%s489_s1 + $0x70] sm:$0xff]  ;;  %v40_v24 = vld [vmem:[%s489_s1 + $0x78] sm:$0xff]  ;;  %v22_v26 = vld [vmem:[%s488_s0] sm:$0xff] }
   0xa   :  { %v313_v25 = vpack.c.bf16 %v40_v24, %v39_v23  ;;  %v23_v27 = vld [vmem:[%s488_s0 + $0x8] sm:$0xff]  ;;  %v24_v28 = vld [vmem:[%s488_s0 + $0x10] sm:$0xff]  ;;  %v226_v29 = vld [vmem:[%s490_s2] ss:$0 sm:$0xff]  ;;  %v184_v5 = vadd.s32 16, %v182_v2 }
   0xb   :  { %v227_v36 = vld [vmem:[%s491_s3] ss:$0 sm:$0xff]  ;;  %s376_s3 = smov [#allocation3]  }
   0xc   :  { %299 = vmatpush3.bf16.msra.mxu0 %v298_v10  ;;  %325 = vmatpush3.bf16.msra.mxu1 %v298_v10  ;;  %vm191_vm3 = vcmp.lt.s32.totalorder %v184_v5, 18  ;;  %s218_s4 = sshll.u32 %s376_s3, 4  ;;  %s219_s4 = int_to_ptr.vmem [resolvable:$true] %s218_s4 }
   0xd   :  { %300 = vmatprep.subr.bf16.mxu0 %v373_v3  ;;  %318 = vmatprep.subr.bf16.mxu1 %v373_v3  ;;  %s349_s10 = scalar_lea.vmem %s219_s4, 128  ;;  %p354_p1 = scmp.lt.s32.totalorder %s219_s4, %s219_s4 }
   0xe   :  { %p350_p0 = scmp.ne.s32.totalorder %s219_s4, %s349_s10  ;;  %p355_p2 = scmp.lt.s32.totalorder %s349_s10, %s349_s10 }
  0x10   :  { %302 = vmatpush3.bf16.msra.mxu0 %v301_v13  ;;  %326 = vmatpush3.bf16.msra.mxu1 %v301_v13  ;;  %p356_p3 = por %p355_p2, %p354_p1 }
  0x11   :  { %303 = vmatprep.subr.bf16.mxu0 %v373_v3  ;;  %319 = vmatprep.subr.bf16.mxu1 %v373_v3 }
  0x12   :  { %p357_p4 = pnand %p356_p3, %p350_p0 }
  0x14   :  { %305 = vmatpush3.bf16.msra.mxu0 %v304_v16  ;;  %327 = vmatpush3.bf16.msra.mxu1 %v304_v16 }
  0x15   :  { %306 = vmatprep.subr.bf16.mxu0 %v373_v3  ;;  %320 = vmatprep.subr.bf16.mxu1 %v373_v3 }
  0x18   :  { %308 = vmatpush3.bf16.msra.mxu0 %v307_v19  ;;  %328 = vmatpush3.bf16.msra.mxu1 %v307_v19 }
  0x19   :  { %309 = vmatprep.subr.bf16.mxu0 %v373_v3  ;;  %321 = vmatprep.subr.bf16.mxu1 %v373_v3 }
  0x1c   :  { %311 = vmatpush3.bf16.msra.mxu0 %v310_v22  ;;  %329 = vmatpush3.bf16.msra.mxu1 %v310_v22 }
  0x1d   :  { %312 = vmatprep.subr.bf16.mxu0 %v373_v3  ;;  %322 = vmatprep.subr.bf16.mxu1 %v373_v3 }
  0x20   :  { %314 = vmatpush3.bf16.msra.mxu0 %v313_v25  ;;  %330 = vmatpush3.bf16.msra.mxu1 %v313_v25 }
  0x23   :  { %283 = vmatmul.mubr.f32.vlgmr.msra.gmra.mrb[0].mxu0 %v22_v26  ;;  %286 = vmatmul.mubr.f32.vlgmr.msra.gmra.mrb[0].mxu1 %v23_v27 }
  0x24   :  { %288 = vmatprep.mubr.msk.f32.mxu1 %vm374_vm0, %v375_v6 }
  0x27   :  { %289 = vmatmul.mubr.f32.gmra.mrb[2].mxu1 %v24_v28 }
  0xf6   :  { %v114_v30 = vpop.f32.mrb[0].mxu0  ;;  %v119_v31 = vpop.f32.mrb[0].mxu1 }
  0xf7   :  { %v115_v32 = vadd.f32 %v226_v29, %v114_v30  ;;  %v120_v33 = vadd.f32 %v226_v29, %v119_v31  ;;  %v284_v34 = vpop.f32.mrb[1].mxu0  ;;  %v287_v35 = vpop.f32.mrb[1].mxu1 }
  0xf9   :  { %v128_v37 = vmax.f32 %v115_v32, 0.0  ;;  %v129_v38 = vmax.f32 %v120_v33, 0.0 }
  0xfa   :  { %v124_v39 = vpop.f32.mrb[2].mxu1 }
  0xfb   :  { %v125_v40 = vadd.f32 %v226_v29, %v124_v39  ;;  %v290_v41 = vpop.f32.mrb[3].mxu1  ;;  %v138_v42 = vmul.f32 %v227_v36, %v128_v37  ;;  %v139_v45 = vmul.f32 %v227_v36, %v129_v38 }
  0xfd   :  { %v130_v43 = vmax.f32 %v125_v40, 0.0  ;;  %v142_v44 = vsel %vm141_vm1, %v138_v42, 0.0  ;;  %v145_v47 = vsel %vm141_vm1, %v139_v45, 0.0 }
  0xfe   :  { %143 = vadd.xlane.f32.xlu0 %v142_v44 }
  0xff   :  { %v140_v46 = vmul.f32 %v227_v36, %v130_v43 }
 0x101   :  { %v148_v48 = vsel %vm141_vm1, %v140_v46, 0.0 }
 0x102   :  { %146 = vadd.xlane.f32.xlu0 %v145_v47  ;;  %149 = vadd.xlane.f32.xlu1 %v148_v48 }
 0x18b   :  { %v144_v50 = vpop.xlane.xlu0 %143 }
 0x18c   :  { %v153_v51 = vadd.f32 %v152_v49, %v144_v50 }
 0x18e   :  { %v228_v52 = vmul.f32 -1.442695, %v153_v51 }
 0x18f   :  { %v147_v53 = vpop.xlane.xlu0 %146  ;;  %v150_v54 = vpop.xlane.xlu1 %149 }
 0x190   :  { %337 = vpow2.f32 %v228_v52  ;;  %v154_v55 = vadd.f32 %v152_v49, %v147_v53  ;;  %v155_v56 = vadd.f32 %v152_v49, %v150_v54 }
 0x192   :  { %v229_v57 = vmul.f32 -1.442695, %v154_v55  ;;  %v230_v58 = vmul.f32 -1.442695, %v155_v56 }
 0x194   :  { %339 = vpow2.f32 %v229_v57 }
 0x195   :  { %341 = vpow2.f32 %v230_v58 }
 0x19a   :  { %v338_v59 = vpop.eup %337 }
 0x19b   :  { %v165_v60 = vadd.f32 1.0, %v338_v59 }
 0x19d   :  { %343 = vrcp.f32 %v165_v60 }
 0x19e   :  { %v340_v61 = vpop.eup %339 }
 0x19f   :  { %v342_v62 = vpop.eup %341  ;;  %v166_v63 = vadd.f32 1.0, %v340_v61 }
 0x1a0   :  { %v167_v0 = vadd.f32 1.0, %v342_v62 }
 0x1a1   :  { %345 = vrcp.f32 %v166_v63 }
 0x1a2   :  { %347 = vrcp.f32 %v167_v0 }
 0x1a7   :  { %v344_v3 = vpop.eup %343 }
 0x1a8   :  { %v174_v4 = vmul.f32 0.5, %v344_v3 }
 0x1aa   :  { %v177_v9 = vadd.f32 0.5, %v174_v4 }
 0x1ab   :  { %v346_v6 = vpop.eup %345 }
 0x1ac   :  { %v348_v7 = vpop.eup %347  ;;  %v175_v8 = vmul.f32 0.5, %v346_v6  ;;  %v196_v13 = vsel %vm195_vm2, %v177_v9, 0.0 }
 0x1ad   :  { %v176_v10 = vmul.f32 0.5, %v348_v7 }
 0x1ae   :  { %v178_v11 = vadd.f32 0.5, %v175_v8 }
 0x1af   :  { %v179_v12 = vadd.f32 0.5, %v176_v10 }
 0x1b0   :  { %v197_v14 = vsel %vm195_vm2, %v178_v11, 0.0 }
 0x1b1   :  { %v194_v15 = vsel %vm191_vm3, %v179_v12, 0.0  ;;  %v198_v16 = vadd.f32 %v197_v14, %v196_v13 }
 0x1b2   :  { %v199_v17 = vsel %vm195_vm2, %v194_v15, 0.0 }
 0x1b3   :  { %v200_v18 = vadd.f32 %v199_v17, %v198_v16 }
 0x1b5   :  { %201 = vadd.xlane.f32.xlu1 %v200_v18 }
 0x242   :  { %v202_v19 = vpop.xlane.xlu1 %201 }
 0x243   :  { %v203_v20 = vrot.slane %v202_v19, 4 }
 0x245   :  { %v204_v21 = vadd.f32 %v203_v20, %v202_v19 }
 0x247   :  { %v205_v22 = vrot.slane %v204_v21, 2 }
 0x249   :  { %v206_v23 = vadd.f32 %v205_v22, %v204_v21 }
 0x24b   :  { %v207_v24 = vrot.slane %v206_v23, 1 }
 0x24d   :  { %v208_v25 = vadd.f32 %v207_v24, %v206_v23 }
 0x24f   :  { %331 = vpush %v208_v25 }
 0x280   :  { %s332_s9 = spop %331 }
 0x281   :  { %v210_v26 = vstv %s332_s9 }
 0x282   :  { %211 = vst [vmem:[#allocation3] sm:$0xff] %v210_v26 }
 0x283   :  { %360 = shalt.err (!%p357_p4)
}
 0x284   :  { %s361_s13 = scalar_lea.hbm %s493_s5, 128 }
 0x285   :  { %p362_p5 = scmp.ne.s32.totalorder %s493_s5, %s361_s13  ;;  %p365_p6 = scmp.lt.u32.totalorder %s361_s13, %s493_s5 }
 0x287   :  { %p367_p7 = pnand %p365_p6, %p362_p5 }
 0x289   :  { %370 = shalt.err (!%p367_p7)
}
 0x28a   :  { %221 = dma.vmem_to_hbm [thread:$0]  %s219_s4, 128, %s493_s5, [#allocation4]  }
 0x28b   :  { %371 = dma.done.wait [#allocation4], 128  }
 0x28c   :  { %372 = vsyncadd [#allocation4], 4294967168 }
 0x28d   :  { %225 = vsyncpa [#allocation4], 1 }

</bundles_post_ra>
